<compile_context>
chip_gen: v7x
topology: tpu7x:2x2x1
jax: 0.10.0
libtpu: 0.0.40
codegen_flags: <defaults>
</compile_context>

<pallas_src>
import functools

import jax
import jax.numpy as jnp
from jax.experimental import pallas as pl
from jax.experimental.pallas import tpu as pltpu


def _make_kernel(H):
    def kernel(x_ref, b1m_ref, ln_ref, s_ref, b2m_ref, b2_ref, out_ref):
        x = x_ref[...].astype(jnp.float32)                 # (M, W*Cin), M = N*H
        M = x.shape[0]

        # Row-halo masks, computed once and shared by both convs (Cin == Cmid).
        # Hoisted because JAX does not CSE broadcast_in_dim.
        rows = jax.lax.broadcasted_iota(jnp.int32, x.shape, 0)
        top = (rows % H) == 0            # first row of each image -> zero pad above
        bot = (rows % H) == (H - 1)      # last row of each image  -> zero pad below

        def row_taps(inp):
            # Three ky taps via sublane rolls (XLU) + masks, lane-concatenated
            # so each conv is ONE MXU matmul with K = 3*W*C.
            dn = jnp.where(top, 0.0, pltpu.roll(inp, shift=1, axis=0))      # inp[h-1]
            up = jnp.where(bot, 0.0, pltpu.roll(inp, shift=M - 1, axis=0))  # inp[h+1]
            return jnp.concatenate([dn, inp, up], axis=-1)                  # (M, 3*W*C)

        lnp = ln_ref[...].astype(jnp.float32)              # (3, W*Cmid)
        bias1_c = lnp[0:1]                                 # b1 - mean(b1), tiled
        gamma = lnp[1:2]
        beta = lnp[2:3]

        # conv1 with LayerNorm mean-centering folded into the weights:
        # yc = conv1(x) - mean_c(conv1(x)), in a single matmul.
        yc = jnp.dot(row_taps(x), b1m_ref[...],
                     preferred_element_type=jnp.float32) + bias1_c          # (M, W*Cmid)

        # LayerNorm variance = E[yc^2] via block-diagonal averaging matrix S
        # (MXU); rsqrt on the EUP.  yc is centered, so var >= 0 always.
        var = jnp.dot(yc * yc, s_ref[...], preferred_element_type=jnp.float32)
        normed = yc * jax.lax.rsqrt(var + 1e-5) * gamma + beta

        # ReLU + conv2 (single wide matmul; 128-lane output -> unmasked vst).
        mid = jnp.maximum(normed, 0.0)
        out = jnp.dot(row_taps(mid), b2m_ref[...],
                      preferred_element_type=jnp.float32)
        out = out + b2_ref[...].astype(jnp.float32)
        out_ref[...] = out.astype(out_ref.dtype)

    return kernel


def _build_row_tap_matrices(w_oihw, W):
    """OIHW 3x3 conv weight -> (3, W*Cin, W*Cout) row-tap matrices.

    B[ky, si*Cin + ci, wj*Cout + co] = w[co, ci, ky, si - wj + 1]
    whenever 0 <= si - wj + 1 < 3, else 0.  Zero padding along W is handled
    implicitly because out-of-range source columns are simply absent.
    """
    Cout, Cin, KH, KW = w_oihw.shape
    w_t = jnp.transpose(w_oihw, (2, 3, 1, 0)).astype(jnp.float32)   # (KH, KW, Cin, Cout)
    si = jnp.arange(W)[:, None]                                     # source column
    wj = jnp.arange(W)[None, :]                                     # output column
    kx = si - wj + 1                                                # (W, W)
    valid = ((kx >= 0) & (kx < KW)).astype(jnp.float32)
    kx_c = jnp.clip(kx, 0, KW - 1)
    blocks = w_t[:, kx_c, :, :]                                     # (KH, W, W, Cin, Cout)
    blocks = blocks * valid[None, :, :, None, None]
    # -> (KH, si, ci, wj, co) -> (KH, W*Cin, W*Cout)
    return jnp.transpose(blocks, (0, 1, 3, 2, 4)).reshape(KH, W * Cin, W * Cout)


def prepare_subnet_conv_ln_params(w1, b1, gamma, beta, w2, b2, W):
    """One-time (per weight update) preprocessing — hoisted out of the forward."""
    Cmid, Cin = w1.shape[0], w1.shape[1]
    Cout = w2.shape[0]
    assert Cmid == Cin, "module defines dim_mid = dim_in"

    # Block-diagonal channel-averaging matrix: S[w*Cmid+ci, w*Cmid+cj] = 1/Cmid.
    s = (jnp.repeat(jnp.repeat(jnp.eye(W, dtype=jnp.float32), Cmid, axis=0),
                    Cmid, axis=1) / Cmid)                           # (W*Cmid, W*Cmid)
    i_minus_s = jnp.eye(W * Cmid, dtype=jnp.float32) - s

    # conv1 row taps with LN mean-centering folded in, stacked for one matmul.
    b1m = _build_row_tap_matrices(w1, W)                            # (3, W*Cin, W*Cmid)
    b1m_c = jnp.einsum('kio,oj->kij', b1m, i_minus_s)
    b1m_stacked = b1m_c.reshape(3 * W * Cin, W * Cmid)

    # Merged LN params: [centered bias, gamma, beta], each tiled across W.
    ln_params = jnp.stack([
        jnp.tile((b1 - b1.mean()).astype(jnp.float32), W),
        jnp.tile(gamma.astype(jnp.float32), W),
        jnp.tile(beta.astype(jnp.float32), W),
    ], axis=0)                                                      # (3, W*Cmid)

    # conv2 row taps stacked for one matmul, plus tiled bias.
    b2m_stacked = _build_row_tap_matrices(w2, W).reshape(3 * W * Cmid, W * Cout)
    b2t = jnp.tile(b2.astype(jnp.float32), W).reshape(1, W * Cout)

    return {
        "b1m": b1m_stacked, "ln": ln_params, "s": s,
        "b2m": b2m_stacked, "b2t": b2t,
        "cout": Cout,
    }


@functools.partial(jax.jit, static_argnames=())
def subnet_conv_ln(x_nchw, params):
    """x_nchw: (N, Cin, H, W).  params: output of prepare_subnet_conv_ln_params."""
    N, Cin, H, W = x_nchw.shape
    Cout = params["b2m"].shape[1] // W

    # NCHW -> lane-dense (N*H, W*Cin): all images folded into one block so the
    # kernel runs once (no serial grid steps on single-TC chips).
    x2d = jnp.transpose(x_nchw, (0, 2, 3, 1)).reshape(N * H, W * Cin)

    out2d = pl.pallas_call(
        _make_kernel(H),
        out_shape=jax.ShapeDtypeStruct((N * H, W * Cout), x_nchw.dtype),
    )(x2d, params["b1m"], params["ln"], params["s"], params["b2m"], params["b2t"])

    # (N*H, W*Cout) -> NCHW.
    # TODO(synk): keep activations in the lane-dense layout across the network
    # to avoid the HBM round trips of these transposes at production sizes.
    return jnp.transpose(out2d.reshape(N, H, W, Cout), (0, 3, 1, 2))


def _reference(x_nchw, w1, b1, gamma, beta, w2, b2):
    """Plain-JAX reference matching the PyTorch module semantics."""
    dn = ("NCHW", "OIHW", "NCHW")
    y = jax.lax.conv_general_dilated(x_nchw, w1, (1, 1), ((1, 1), (1, 1)),
                                     dimension_numbers=dn)
    y = y + b1[None, :, None, None]
    yt = jnp.transpose(y, (0, 2, 3, 1))
    mean = yt.mean(-1, keepdims=True)
    var = ((yt - mean) ** 2).mean(-1, keepdims=True)
    yt = (yt - mean) / jnp.sqrt(var + 1e-5) * gamma + beta
    y = jnp.transpose(yt, (0, 3, 1, 2))
    y = jnp.maximum(y, 0.0)
    y = jax.lax.conv_general_dilated(y, w2, (1, 1), ((1, 1), (1, 1)),
                                     dimension_numbers=dn)
    return y + b2[None, :, None, None]


if __name__ == "__main__":
    # Small shapes consistent with the module: N=2, dim_in=4, dim_out=8, 16x16.
    N, dim_in, dim_out, H, W = 2, 4, 8, 16, 16
    dim_mid = dim_in

    key = jax.random.PRNGKey(0)
    kx, kw1, kb1, kg, kb, kw2, kb2 = jax.random.split(key, 7)

    x = jax.random.normal(kx, (N, dim_in, H, W), jnp.float32)
    w1 = jax.random.normal(kw1, (dim_mid, dim_in, 3, 3), jnp.float32) * 0.1
    b1 = jax.random.normal(kb1, (dim_mid,), jnp.float32) * 0.1
    gamma = jnp.ones((dim_mid,), jnp.float32) + 0.1 * jax.random.normal(kg, (dim_mid,))
    beta = 0.1 * jax.random.normal(kb, (dim_mid,), jnp.float32)
    w2 = jax.random.normal(kw2, (dim_out, dim_mid, 3, 3), jnp.float32) * 0.1
    b2 = jax.random.normal(kb2, (dim_out,), jnp.float32) * 0.1

    # One-time weight preprocessing (hoisted out of the forward pass).
    params = prepare_subnet_conv_ln_params(w1, b1, gamma, beta, w2, b2, W)
    params = jax.tree_util.tree_map(jax.block_until_ready, params)

    out = subnet_conv_ln(x, params)
    out = jax.block_until_ready(out)

    ref = _reference(x, w1, b1, gamma, beta, w2, b2)
    assert out.shape == (N, dim_out, H, W), out.shape
    assert jnp.allclose(out, ref, rtol=1e-4, atol=1e-4), float(jnp.abs(out - ref).max())

    print("KERNEL_OK")
</pallas_src>

<mosaic_0001>
module attributes {stable_mosaic.version = 11 : i64} {
  func.func @kernel(%arg0: memref<32x64xf32, #tpu.memory_space<vmem>>, %arg1: memref<192x64xf32, #tpu.memory_space<vmem>>, %arg2: memref<3x64xf32, #tpu.memory_space<vmem>>, %arg3: memref<64x64xf32, #tpu.memory_space<vmem>>, %arg4: memref<192x128xf32, #tpu.memory_space<vmem>>, %arg5: memref<1x128xf32, #tpu.memory_space<vmem>>, %arg6: memref<32x128xf32, #tpu.memory_space<vmem>>) attributes {dimension_semantics = [], scalar_prefetch = 0 : i64, scratch_operands = 0 : i64, tpu.core_type = #tpu.core_type<tc>} {
    %c0 = arith.constant 0 : index
    %c0_0 = arith.constant 0 : index
    %0 = vector.load %arg0[%c0, %c0_0] : memref<32x64xf32, #tpu.memory_space<vmem>>, vector<32x64xf32>
    %1 = tpu.iota {dimensions = array<i32: 0>} : vector<32x64xi32>
    %c16_i32 = arith.constant 16 : i32
    %c0_i32 = arith.constant 0 : i32
    %2 = arith.cmpi eq, %c16_i32, %c0_i32 : i32
    %c1_i32 = arith.constant 1 : i32
    %3 = arith.select %2, %c1_i32, %c16_i32 : i32
    %4 = vector.broadcast %3 : i32 to vector<32x64xi32>
    %5 = arith.remsi %1, %4 : vector<32x64xi32>
    %c0_i32_1 = arith.constant 0 : i32
    %6 = vector.broadcast %c0_i32_1 : i32 to vector<32x64xi32>
    %7 = arith.cmpi ne, %5, %6 : vector<32x64xi32>
    %c0_i32_2 = arith.constant 0 : i32
    %8 = vector.broadcast %c0_i32_2 : i32 to vector<32x64xi32>
    %9 = arith.cmpi slt, %5, %8 : vector<32x64xi32>
    %c0_i32_3 = arith.constant 0 : i32
    %10 = arith.cmpi slt, %3, %c0_i32_3 : i32
    %11 = vector.broadcast %10 : i1 to vector<32x64xi1>
    %12 = vector.broadcast %11 : vector<32x64xi1> to vector<32x64xi1>
    %13 = arith.xori %9, %12 : vector<32x64xi1>
    %14 = arith.andi %13, %7 : vector<32x64xi1>
    %15 = vector.broadcast %3 : i32 to vector<32x64xi32>
    %16 = arith.addi %5, %15 : vector<32x64xi32>
    %17 = arith.select %14, %16, %5 : vector<32x64xi1>, vector<32x64xi32>
    %c0_i32_4 = arith.constant 0 : i32
    %18 = vector.broadcast %c0_i32_4 : i32 to vector<32x64xi32>
    %19 = arith.cmpi eq, %17, %18 : vector<32x64xi32>
    %c16_i32_5 = arith.constant 16 : i32
    %c0_i32_6 = arith.constant 0 : i32
    %20 = arith.cmpi eq, %c16_i32_5, %c0_i32_6 : i32
    %c1_i32_7 = arith.constant 1 : i32
    %21 = arith.select %20, %c1_i32_7, %c16_i32_5 : i32
    %22 = vector.broadcast %21 : i32 to vector<32x64xi32>
    %23 = arith.remsi %1, %22 : vector<32x64xi32>
    %c0_i32_8 = arith.constant 0 : i32
    %24 = vector.broadcast %c0_i32_8 : i32 to vector<32x64xi32>
    %25 = arith.cmpi ne, %23, %24 : vector<32x64xi32>
    %c0_i32_9 = arith.constant 0 : i32
    %26 = vector.broadcast %c0_i32_9 : i32 to vector<32x64xi32>
    %27 = arith.cmpi slt, %23, %26 : vector<32x64xi32>
    %c0_i32_10 = arith.constant 0 : i32
    %28 = arith.cmpi slt, %21, %c0_i32_10 : i32
    %29 = vector.broadcast %28 : i1 to vector<32x64xi1>
    %30 = vector.broadcast %29 : vector<32x64xi1> to vector<32x64xi1>
    %31 = arith.xori %27, %30 : vector<32x64xi1>
    %32 = arith.andi %31, %25 : vector<32x64xi1>
    %33 = vector.broadcast %21 : i32 to vector<32x64xi32>
    %34 = arith.addi %23, %33 : vector<32x64xi32>
    %35 = arith.select %32, %34, %23 : vector<32x64xi1>, vector<32x64xi32>
    %c15_i32 = arith.constant 15 : i32
    %36 = vector.broadcast %c15_i32 : i32 to vector<32x64xi32>
    %37 = arith.cmpi eq, %35, %36 : vector<32x64xi32>
    %c0_11 = arith.constant 0 : index
    %c0_12 = arith.constant 0 : index
    %38 = vector.load %arg2[%c0_11, %c0_12] : memref<3x64xf32, #tpu.memory_space<vmem>>, vector<3x64xf32>
    %39 = vector.extract_strided_slice %38 {offsets = [0, 0], sizes = [1, 64], strides = [1, 1]} : vector<3x64xf32> to vector<1x64xf32>
    %40 = vector.extract_strided_slice %38 {offsets = [1, 0], sizes = [1, 64], strides = [1, 1]} : vector<3x64xf32> to vector<1x64xf32>
    %41 = vector.extract_strided_slice %38 {offsets = [2, 0], sizes = [1, 64], strides = [1, 1]} : vector<3x64xf32> to vector<1x64xf32>
    %c1_i32_13 = arith.constant 1 : i32
    %42 = tpu.dynamic_rotate %0 by %c1_i32_13 dim 0 : vector<32x64xf32>, i32 -> vector<32x64xf32>
    %cst = arith.constant 0.000000e+00 : f32
    %43 = vector.broadcast %cst : f32 to vector<32x64xf32>
    %44 = arith.select %19, %43, %42 : vector<32x64xi1>, vector<32x64xf32>
    %c31_i32 = arith.constant 31 : i32
    %45 = tpu.dynamic_rotate %0 by %c31_i32 dim 0 : vector<32x64xf32>, i32 -> vector<32x64xf32>
    %cst_14 = arith.constant 0.000000e+00 : f32
    %46 = vector.broadcast %cst_14 : f32 to vector<32x64xf32>
    %47 = arith.select %37, %46, %45 : vector<32x64xi1>, vector<32x64xf32>
    %48 = tpu.concatenate %44, %0, %47 in 1 : vector<32x64xf32>, vector<32x64xf32>, vector<32x64xf32> -> vector<32x192xf32>
    %c0_15 = arith.constant 0 : index
    %c0_16 = arith.constant 0 : index
    %49 = vector.load %arg1[%c0_15, %c0_16] : memref<192x64xf32, #tpu.memory_space<vmem>>, vector<192x64xf32>
    %cst_17 = arith.constant dense<0.000000e+00> : vector<32x64xf32>
    %50 = tpu.matmul %48, %49, %cst_17 {dimension_numbers = #tpu.dot_dimension_numbers<[1], [0], [0], [1], [0, 0, 1, 1], [], []>} : vector<32x192xf32>, vector<192x64xf32>, vector<32x64xf32> -> vector<32x64xf32>
    %51 = vector.broadcast %39 : vector<1x64xf32> to vector<32x64xf32>
    %52 = arith.addf %50, %51 : vector<32x64xf32>
    %53 = arith.mulf %52, %52 : vector<32x64xf32>
    %c0_18 = arith.constant 0 : index
    %c0_19 = arith.constant 0 : index
    %54 = vector.load %arg3[%c0_18, %c0_19] : memref<64x64xf32, #tpu.memory_space<vmem>>, vector<64x64xf32>
    %cst_20 = arith.constant dense<0.000000e+00> : vector<32x64xf32>
    %55 = tpu.matmul %53, %54, %cst_20 {dimension_numbers = #tpu.dot_dimension_numbers<[1], [0], [0], [1], [0, 0, 1, 1], [], []>} : vector<32x64xf32>, vector<64x64xf32>, vector<32x64xf32> -> vector<32x64xf32>
    %cst_21 = arith.constant 9.99999974E-6 : f32
    %56 = vector.broadcast %cst_21 : f32 to vector<32x64xf32>
    %57 = arith.addf %55, %56 : vector<32x64xf32>
    %58 = math.rsqrt %57 : vector<32x64xf32>
    %59 = arith.mulf %52, %58 : vector<32x64xf32>
    %60 = vector.broadcast %40 : vector<1x64xf32> to vector<32x64xf32>
    %61 = arith.mulf %59, %60 : vector<32x64xf32>
    %62 = vector.broadcast %41 : vector<1x64xf32> to vector<32x64xf32>
    %63 = arith.addf %61, %62 : vector<32x64xf32>
    %cst_22 = arith.constant 0.000000e+00 : f32
    %64 = vector.broadcast %cst_22 : f32 to vector<32x64xf32>
    %65 = arith.maximumf %63, %64 : vector<32x64xf32>
    %c1_i32_23 = arith.constant 1 : i32
    %66 = tpu.dynamic_rotate %65 by %c1_i32_23 dim 0 : vector<32x64xf32>, i32 -> vector<32x64xf32>
    %cst_24 = arith.constant 0.000000e+00 : f32
    %67 = vector.broadcast %cst_24 : f32 to vector<32x64xf32>
    %68 = arith.select %19, %67, %66 : vector<32x64xi1>, vector<32x64xf32>
    %c31_i32_25 = arith.constant 31 : i32
    %69 = tpu.dynamic_rotate %65 by %c31_i32_25 dim 0 : vector<32x64xf32>, i32 -> vector<32x64xf32>
    %cst_26 = arith.constant 0.000000e+00 : f32
    %70 = vector.broadcast %cst_26 : f32 to vector<32x64xf32>
    %71 = arith.select %37, %70, %69 : vector<32x64xi1>, vector<32x64xf32>
    %72 = tpu.concatenate %68, %65, %71 in 1 : vector<32x64xf32>, vector<32x64xf32>, vector<32x64xf32> -> vector<32x192xf32>
    %c0_27 = arith.constant 0 : index
    %c0_28 = arith.constant 0 : index
    %73 = vector.load %arg4[%c0_27, %c0_28] : memref<192x128xf32, #tpu.memory_space<vmem>>, vector<192x128xf32>
    %cst_29 = arith.constant dense<0.000000e+00> : vector<32x128xf32>
    %74 = tpu.matmul %72, %73, %cst_29 {dimension_numbers = #tpu.dot_dimension_numbers<[1], [0], [0], [1], [0, 0, 1, 1], [], []>} : vector<32x192xf32>, vector<192x128xf32>, vector<32x128xf32> -> vector<32x128xf32>
    %c0_30 = arith.constant 0 : index
    %c0_31 = arith.constant 0 : index
    %75 = vector.load %arg5[%c0_30, %c0_31] : memref<1x128xf32, #tpu.memory_space<vmem>>, vector<1x128xf32>
    %76 = vector.broadcast %75 : vector<1x128xf32> to vector<32x128xf32>
    %77 = arith.addf %74, %76 : vector<32x128xf32>
    %c0_32 = arith.constant 0 : index
    %c0_33 = arith.constant 0 : index
    %78 = vector.load %arg6[%c0_32, %c0_33] : memref<32x128xf32, #tpu.memory_space<vmem>>, vector<32x128xf32>
    tpu.vector_store %arg6[%c0_32, %c0_33], %77 {strides = array<i32>} : memref<32x128xf32, #tpu.memory_space<vmem>>, vector<32x128xf32>,
    return
  }
}

</mosaic_0001>

<bundles_post_ra>
// kernel: subnet_conv_ln.1
= control target key start
LH: loop header
LB: loop body
LE: loop exit
PB: predicated region body
PF: predicated region fallthrough
CT: control target
= control target key end

     0   :  { %v27_v0 = vlaneseq  ;;  %v723_v4 = vmov 0.0|0.0   ;;  %s724_s27 = smov 64   ;;  %vm131_vm0 = vcmask 523264   ;;  %s1131_s0 = inlined_call_operand.vmem [shape: f32[32,64], index: 0, kind: input, shape index: {}]   ;;  %s1132_s1 = inlined_call_operand.vmem [shape: f32[192,64], index: 1, kind: input, shape index: {}]   ;;  %s1133_s3 = inlined_call_operand.vmem [shape: f32[64,64], index: 3, kind: input, shape index: {}]   ;;  %s1134_s2 = inlined_call_operand.vmem [shape: f32[3,64], index: 2, kind: input, shape index: {}]   ;;  %s1135_s4 = inlined_call_operand.vmem [shape: f32[192,128], index: 4, kind: input, shape index: {}]   ;;  %s1136_s5 = inlined_call_operand.vmem [shape: f32[1,128], index: 5, kind: input, shape index: {}]   ;;  %s1137_s6 = inlined_call_operand.vmem [shape: f32[32,128], index: 6, kind: output, shape index: {}]  }
   0x1   :  { %v23_v1 = vld [vmem:[%s1131_s0] sm:$0xff]  ;;  %v24_v2 = vld [vmem:[%s1131_s0 + $0x8] sm:$0xff]  ;;  %v25_v3 = vld [vmem:[%s1131_s0 + $0x10] sm:$0xff]  ;;  %625 = vmatprep.subr.bf16.mxu0 %v723_v4  ;;  %677 = vmatprep.subr.bf16.mxu1 %v723_v4 }
   0x2   :  { %119 = vrot.lane.b32.xlu0 %v23_v1, %s724_s27  ;;  %123 = vrot.lane.b32.xlu1 %v25_v3, %s724_s27  ;;  %v26_v5 = vld [vmem:[%s1131_s0 + $0x18] sm:$0xff]  ;;  %v136_v6 = vld [vmem:[%s1132_s1] sm:$0xff]  ;;  %v89_v7 = vrot.slane %v23_v1, 7  ;;  %v102_v8 = vrot.slane %v23_v1, 1  ;;  %v103_v9 = vrot.slane %v24_v2, 1  ;;  %v104_v12 = vrot.slane %v25_v3, 1 }
   0x3   :  { %v92_v10 = vrot.slane %v26_v5, 7  ;;  %v137_v11 = vld [vmem:[%s1132_s1 + $0x8] sm:$0xff]  ;;  %v138_v14 = vld [vmem:[%s1132_s1 + $0x10] sm:$0xff]  ;;  %v139_v15 = vld [vmem:[%s1132_s1 + $0x18] sm:$0xff]  ;;  %v788_v16 = vshrl.u32 %v27_v0, 7  ;;  %v90_v17 = vrot.slane %v24_v2, 7 }
   0x4   :  { %v626_v13 = vpack.c.bf16 %v137_v11, %v136_v6  ;;  %v105_v18 = vrot.slane %v26_v5, 1  ;;  %v91_v19 = vrot.slane %v25_v3, 7  ;;  %v629_v20 = vpack.c.bf16 %v139_v15, %v138_v14  ;;  %v140_v23 = vld [vmem:[%s1132_s1 + $0x20] sm:$0xff]  ;;  %v141_v24 = vld [vmem:[%s1132_s1 + $0x28] sm:$0xff]  ;;  %v142_v30 = vld [vmem:[%s1132_s1 + $0x30] sm:$0xff] }
   0x5   :  { %vm106_vm1 = vcmp.lt.s32.totalorder %v788_v16, 7  ;;  %vm93_vm2 = vcmp.lt.s32.totalorder %v788_v16, 1  ;;  %v632_v28 = vpack.c.bf16 %v141_v24, %v140_v23  ;;  %v143_v31 = vld [vmem:[%s1132_s1 + $0x38] sm:$0xff]  ;;  %v144_v35 = vld [vmem:[%s1132_s1 + $0x40] sm:$0xff]  ;;  %v145_v36 = vld [vmem:[%s1132_s1 + $0x48] sm:$0xff]  ;;  %v29_v62 = vadd.s32 8, %v788_v16 }
   0x6   :  { %121 = vrot.lane.b32.xlu0 %v24_v2, %s724_s27  ;;  %125 = vrot.lane.b32.xlu1 %v26_v5, %s724_s27  ;;  %v109_v21 = vsel %vm106_vm1, %v102_v8, %v103_v9  ;;  %v798_v22 = vsel %vm93_vm2, %v92_v10, %v89_v7  ;;  %v810_v25 = vsel %vm106_vm1, %v103_v9, %v104_v12  ;;  %v146_v38 = vld [vmem:[%s1132_s1 + $0x50] sm:$0xff]  ;;  %v147_v39 = vld [vmem:[%s1132_s1 + $0x58] sm:$0xff]  ;;  %v36_v63 = vand.u32 15, %v788_v16 }
   0x7   :  { %627 = vmatpush1.bf16.msra.mxu0 %v626_v13  ;;  %578 = vmatprep.mubr.msk.f32.mxu0 %vm131_vm0, %v109_v21  ;;  %v814_v26 = vsel %vm93_vm2, %v89_v7, %v90_v17  ;;  %v818_v27 = vsel %vm106_vm1, %v104_v12, %v105_v18  ;;  %v822_v29 = vsel %vm93_vm2, %v90_v17, %v91_v19  ;;  %v148_v41 = vld [vmem:[%s1132_s1 + $0x60] sm:$0xff]  ;;  %v149_v42 = vld [vmem:[%s1132_s1 + $0x68] sm:$0xff]  ;;  %v150_v44 = vld [vmem:[%s1132_s1 + $0x70] sm:$0xff]  ;;  %v43_v0 = vand.u32 15, %v29_v62 }
   0x8   :  { %628 = vmatprep.subr.bf16.mxu0 %v723_v4  ;;  %v833_v32 = vsel %vm106_vm1, %v105_v18, %v102_v8  ;;  %v837_v33 = vsel %vm93_vm2, %v91_v19, %v92_v10  ;;  %v635_v34 = vpack.c.bf16 %v143_v31, %v142_v30  ;;  %v638_v37 = vpack.c.bf16 %v145_v36, %v144_v35  ;;  %v151_v45 = vld [vmem:[%s1132_s1 + $0x78] sm:$0xff]  ;;  %v152_v47 = vld [vmem:[%s1132_s1 + $0x80] sm:$0xff]  ;;  %v153_v48 = vld [vmem:[%s1132_s1 + $0x88] sm:$0xff] }
   0x9   :  { %v641_v40 = vpack.c.bf16 %v147_v39, %v146_v38  ;;  %v644_v43 = vpack.c.bf16 %v149_v42, %v148_v41  ;;  %v647_v46 = vpack.c.bf16 %v151_v45, %v150_v44  ;;  %v650_v49 = vpack.c.bf16 %v153_v48, %v152_v47  ;;  %v154_v50 = vld [vmem:[%s1132_s1 + $0x90] sm:$0xff]  ;;  %v155_v51 = vld [vmem:[%s1132_s1 + $0x98] sm:$0xff]  ;;  %v156_v53 = vld [vmem:[%s1132_s1 + $0xa0] sm:$0xff] }
   0xa   :  { %v653_v52 = vpack.c.bf16 %v155_v51, %v154_v50  ;;  %v157_v54 = vld [vmem:[%s1132_s1 + $0xa8] sm:$0xff]  ;;  %v158_v56 = vld [vmem:[%s1132_s1 + $0xb0] sm:$0xff]  ;;  %v159_v57 = vld [vmem:[%s1132_s1 + $0xb8] sm:$0xff]  ;;  %v30_v1 = vadd.s32 16, %v788_v16  ;;  %vm905_vm3 = vcmp.eq.s32.totalorder %v36_v63, 0  ;;  %vm909_vm4 = vcmp.eq.s32.totalorder %v43_v0, 15 }
   0xb   :  { %630 = vmatpush1.bf16.msra.mxu0 %v629_v20  ;;  %v656_v55 = vpack.c.bf16 %v157_v54, %v156_v53  ;;  %v265_v58 = vld [vmem:[%s1133_s3] sm:$0xff]  ;;  %v266_v59 = vld [vmem:[%s1133_s3 + $0x8] sm:$0xff]  ;;  %v659_v60 = vpack.c.bf16 %v159_v57, %v158_v56  ;;  %v31_v6 = vadd.s32 24, %v788_v16  ;;  %v267_v7 = vld [vmem:[%s1133_s3 + $0x10] sm:$0xff]  ;;  %v98_v9 = vsel %vm905_vm3, 0.0, %v798_v22 }
   0xc   :  { %631 = vmatprep.subr.bf16.mxu0 %v723_v4  ;;  %v661_v61 = vpack.c.bf16 %v266_v59, %v265_v58  ;;  %v50_v5 = vand.u32 15, %v30_v1  ;;  %v268_v8 = vld [vmem:[%s1133_s3 + $0x18] sm:$0xff]  ;;  %v112_v11 = vsel %vm909_vm4, 0.0, %v810_v25  ;;  %v442_v51 = vld [vmem:[%s1135_s4] sm:$0xff]  ;;  %v444_v53 = vld [vmem:[%s1135_s4 + $0x10] sm:$0xff] }
   0xd   :  { %v665_v12 = vpack.c.bf16 %v268_v8, %v267_v7  ;;  %v57_v15 = vand.u32 15, %v31_v6  ;;  %v272_v30 = vld [vmem:[%s1133_s3 + $0x38] sm:$0xff]  ;;  %v446_v57 = vld [vmem:[%s1135_s4 + $0x20] sm:$0xff]  ;;  %v447_v58 = vld [vmem:[%s1135_s4 + $0x28] sm:$0xff] }
   0xe   :  { %vm927_vm5 = vcmp.eq.s32.totalorder %v50_v5, 0  ;;  %v684_v59 = vpack.c.bf16 %v447_v58, %v446_v57  ;;  %v450_v63 = vld [vmem:[%s1135_s4 + $0x40] sm:$0xff]  ;;  %v451_v0 = vld [vmem:[%s1135_s4 + $0x48] sm:$0xff]  ;;  %v452_v5 = vld [vmem:[%s1135_s4 + $0x50] sm:$0xff] }
   0xf   :  { %633 = vmatpush1.bf16.msra.mxu0 %v632_v28  ;;  %v100_v19 = vsel %vm927_vm5, 0.0, %v822_v29  ;;  %vm937_vm6 = vcmp.eq.s32.totalorder %v57_v15, 15  ;;  %v271_v29 = vld [vmem:[%s1133_s3 + $0x30] sm:$0xff]  ;;  %v690_v1 = vpack.c.bf16 %v451_v0, %v450_v63  ;;  %v453_v6 = vld [vmem:[%s1135_s4 + $0x58] sm:$0xff]  ;;  %v454_v8 = vld [vmem:[%s1135_s4 + $0x60] sm:$0xff] }
  0x10   :  { %634 = vmatprep.subr.bf16.mxu0 %v723_v4  ;;  %v114_v24 = vsel %vm937_vm6, 0.0, %v833_v32  ;;  %v673_v31 = vpack.c.bf16 %v272_v30, %v271_v29  ;;  %v162_v32 = vsub.s32 0, %v788_v16  ;;  %v693_v7 = vpack.c.bf16 %v453_v6, %v452_v5  ;;  %v458_v15 = vld [vmem:[%s1135_s4 + $0x80] sm:$0xff] }
  0x13   :  { %636 = vmatpush1.bf16.msra.mxu0 %v635_v34 }
  0x14   :  { %637 = vmatprep.subr.bf16.mxu0 %v723_v4 }
  0x17   :  { %639 = vmatpush1.bf16.msra.mxu0 %v638_v37 }
  0x18   :  { %640 = vmatprep.subr.bf16.mxu0 %v723_v4 }
  0x1b   :  { %642 = vmatpush1.bf16.msra.mxu0 %v641_v40 }
  0x1c   :  { %643 = vmatprep.subr.bf16.mxu0 %v723_v4 }
  0x1f   :  { %645 = vmatpush1.bf16.msra.mxu0 %v644_v43 }
  0x20   :  { %646 = vmatprep.subr.bf16.mxu0 %v723_v4 }
  0x23   :  { %648 = vmatpush1.bf16.msra.mxu0 %v647_v46 }
  0x24   :  { %649 = vmatprep.subr.bf16.mxu0 %v723_v4 }
  0x27   :  { %651 = vmatpush1.bf16.msra.mxu0 %v650_v49 }
  0x28   :  { %652 = vmatprep.subr.bf16.mxu0 %v723_v4 }
  0x2b   :  { %654 = vmatpush1.bf16.msra.mxu0 %v653_v52  ;;  %v443_v52 = vld [vmem:[%s1135_s4 + $0x8] sm:$0xff] }
  0x2c   :  { %655 = vmatprep.subr.bf16.mxu0 %v723_v4  ;;  %v678_v54 = vpack.c.bf16 %v443_v52, %v442_v51 }
  0x2e   :  { %679 = vmatpush1.bf16.msra.mxu1 %v678_v54 }
  0x2f   :  { %657 = vmatpush1.bf16.msra.mxu0 %v656_v55  ;;  %v445_v55 = vld [vmem:[%s1135_s4 + $0x18] sm:$0xff]  ;;  %680 = vmatprep.subr.bf16.mxu1 %v723_v4 }
  0x30   :  { %658 = vmatprep.subr.bf16.mxu0 %v723_v4  ;;  %v681_v56 = vpack.c.bf16 %v445_v55, %v444_v53 }
  0x32   :  { %682 = vmatpush1.bf16.msra.mxu1 %v681_v56 }
  0x33   :  { %660 = vmatpush1.bf16.msra.mxu0 %v659_v60  ;;  %683 = vmatprep.subr.bf16.mxu1 %v723_v4  ;;  %v448_v60 = vld [vmem:[%s1135_s4 + $0x30] sm:$0xff] }
  0x34   :  { %662 = vmatprep.subr.bf16.mxu0 %v661_v61 }
  0x36   :  { %685 = vmatpush1.bf16.msra.mxu1 %v684_v59 }
  0x37   :  { %686 = vmatprep.subr.bf16.mxu1 %v723_v4 }
  0x74   :  { %v120_v10 = vpop.permute.xlu0 %119  ;;  %v124_v17 = vpop.permute.xlu1 %123 }
  0x75   :  { %v132_v13 = vsel %vm131_vm0, %v98_v9, %v120_v10  ;;  %v134_v22 = vsel %vm131_vm0, %v100_v19, %v124_v17  ;;  %v455_v9 = vld [vmem:[%s1135_s4 + $0x68] sm:$0xff]  ;;  %v460_v19 = vld [vmem:[%s1135_s4 + $0x90] sm:$0xff] }
  0x76   :  { %241 = vmatmul.mubr.f32.vlgmr.msra.gmra.mrb[0].mxu0 %v132_v13  ;;  %v696_v10 = vpack.c.bf16 %v455_v9, %v454_v8  ;;  %v459_v17 = vld [vmem:[%s1135_s4 + $0x88] sm:$0xff] }
  0x77   :  { %579 = vmatprep.mubr.msk.f32.mxu0 %vm131_vm0, %v112_v11  ;;  %664 = vmatpush3.bf16.msra.mxu0 %v661_v61  ;;  %v449_v61 = vld [vmem:[%s1135_s4 + $0x38] sm:$0xff]  ;;  %v456_v11 = vld [vmem:[%s1135_s4 + $0x70] sm:$0xff] }
  0x78   :  { %v122_v18 = vpop.permute.xlu0 %121  ;;  %666 = vmatprep.subr.bf16.mxu0 %v665_v12  ;;  %v126_v23 = vpop.permute.xlu1 %125  ;;  %v687_v62 = vpack.c.bf16 %v449_v61, %v448_v60 }
  0x79   :  { %v133_v20 = vsel %vm131_vm0, %v814_v26, %v122_v18  ;;  %v135_v25 = vsel %vm131_vm0, %v837_v33, %v126_v23  ;;  %v269_v26 = vld [vmem:[%s1133_s3 + $0x20] sm:$0xff]  ;;  %v702_v18 = vpack.c.bf16 %v459_v17, %v458_v15 }
  0x7a   :  { %246 = vmatmul.mubr.f32.gmra.mrb[2].mxu0 %v133_v20  ;;  %v966_v33 = vld [vmem:[%s1134_s2] sm:$0x7]  ;;  %688 = vmatpush1.bf16.msra.mxu1 %v687_v62  ;;  %v461_v20 = vld [vmem:[%s1135_s4 + $0x98] sm:$0xff] }
  0x7b   :  { %580 = vmatprep.mubr.msk.f32.mxu0 %vm131_vm0, %v818_v27  ;;  %668 = vmatpush3.bf16.msra.mxu0 %v665_v12  ;;  %v270_v27 = vld [vmem:[%s1133_s3 + $0x28] sm:$0xff]  ;;  %v163_v34 = vrot.slane %v966_v33, %v162_v32  ;;  %v457_v12 = vld [vmem:[%s1135_s4 + $0x78] sm:$0xff]  ;;  %v462_v23 = vld [vmem:[%s1135_s4 + $0xa0] sm:$0xff] }
  0x7c   :  { %v669_v28 = vpack.c.bf16 %v270_v27, %v269_v26  ;;  %689 = vmatprep.subr.bf16.mxu1 %v723_v4  ;;  %v699_v13 = vpack.c.bf16 %v457_v12, %v456_v11  ;;  %v464_v26 = vld [vmem:[%s1135_s4 + $0xb0] sm:$0xff]  ;;  %v465_v27 = vld [vmem:[%s1135_s4 + $0xb8] sm:$0xff] }
  0x7e   :  { %251 = vmatmul.mubr.f32.gmra.mrb[4].mxu0 %v134_v22  ;;  %670 = vmatprep.subr.bf16.mxu0 %v669_v28  ;;  %v705_v22 = vpack.c.bf16 %v461_v20, %v460_v19 }
  0x7f   :  { %581 = vmatprep.mubr.msk.f32.mxu0 %vm131_vm0, %v114_v24  ;;  %672 = vmatpush3.bf16.msra.mxu0 %v669_v28  ;;  %v463_v24 = vld [vmem:[%s1135_s4 + $0xa8] sm:$0xff]  ;;  %v711_v28 = vpack.c.bf16 %v465_v27, %v464_v26  ;;  %v586_v27 = vld [vmem:[%s1136_s5] ss:$0 sm:$0xff] }
  0x80   :  { %674 = vmatprep.subr.bf16.mxu0 %v673_v31  ;;  %691 = vmatpush1.bf16.msra.mxu1 %v690_v1 }
  0x81   :  { %692 = vmatprep.subr.bf16.mxu1 %v723_v4 }
  0x82   :  { %256 = vmatmul.mubr.f32.gmra.mrb[6].mxu0 %v135_v25  ;;  %v708_v25 = vpack.c.bf16 %v463_v24, %v462_v23 }
  0x83   :  { %676 = vmatpush3.bf16.msra.mxu0 %v673_v31 }
  0x84   :  { %694 = vmatpush1.bf16.msra.mxu1 %v693_v7 }
  0x85   :  { %695 = vmatprep.subr.bf16.mxu1 %v723_v4 }
  0x88   :  { %697 = vmatpush1.bf16.msra.mxu1 %v696_v10 }
  0x89   :  { %698 = vmatprep.subr.bf16.mxu1 %v723_v4 }
  0x8c   :  { %700 = vmatpush1.bf16.msra.mxu1 %v699_v13 }
  0x8d   :  { %701 = vmatprep.subr.bf16.mxu1 %v723_v4 }
  0x90   :  { %703 = vmatpush1.bf16.msra.mxu1 %v702_v18 }
  0x91   :  { %704 = vmatprep.subr.bf16.mxu1 %v723_v4 }
  0x94   :  { %706 = vmatpush1.bf16.msra.mxu1 %v705_v22 }
  0x95   :  { %707 = vmatprep.subr.bf16.mxu1 %v723_v4 }
  0x98   :  { %709 = vmatpush1.bf16.msra.mxu1 %v708_v25 }
  0x99   :  { %710 = vmatprep.subr.bf16.mxu1 %v723_v4 }
  0x9c   :  { %712 = vmatpush1.bf16.msra.mxu1 %v711_v28 }
 0x149   :  { %v242_v35 = vpop.f32.mrb[0].mxu0 }
 0x14a   :  { %v969_v36 = vadd.f32 %v242_v35, %v163_v34  ;;  %v244_v37 = vpop.f32.mrb[1].mxu0 }
 0x14c   :  { %v261_v38 = vmul.f32 %v969_v36, %v969_v36 }
 0x14d   :  { %v247_v39 = vpop.f32.mrb[2].mxu0 }
 0x14e   :  { %v973_v40 = vadd.f32 %v247_v39, %v163_v34  ;;  %v249_v41 = vpop.f32.mrb[3].mxu0  ;;  %619 = vmatprep.mubr.msk.f32.mxu0 %vm131_vm0, %v261_v38 }
 0x14f   :  { %v388_v41 = vsub.s32 2, %v788_v16 }
 0x150   :  { %v262_v42 = vmul.f32 %v973_v40, %v973_v40 }
 0x151   :  { %v252_v43 = vpop.f32.mrb[4].mxu0 }
 0x152   :  { %v978_v44 = vadd.f32 %v252_v43, %v163_v34  ;;  %v254_v45 = vpop.f32.mrb[5].mxu0  ;;  %620 = vmatmul.mubr.msk.f32.vlgmr.msra.gmra.mrb[8].mxu0 %vm131_vm0, %v262_v42 }
 0x154   :  { %v263_v46 = vmul.f32 %v978_v44, %v978_v44 }
 0x155   :  { %v257_v47 = vpop.f32.mrb[6].mxu0 }
 0x156   :  { %v983_v48 = vadd.f32 %v257_v47, %v163_v34  ;;  %v259_v49 = vpop.f32.mrb[7].mxu0  ;;  %622 = vmatprep.mubr.msk.f32.mxu0 %vm131_vm0, %v263_v46  ;;  %v380_v34 = vsub.s32 1, %v788_v16  ;;  %v389_v46 = vrot.slane %v966_v33, %v388_v41 }
 0x158   :  { %v264_v50 = vmul.f32 %v983_v48, %v983_v48  ;;  %v381_v42 = vrot.slane %v966_v33, %v380_v34 }
 0x15a   :  { %623 = vmatmul.mubr.msk.f32.gmra.mrb[10].mxu0 %vm131_vm0, %v264_v50 }
 0x225   :  { %v621_v29 = vpop.f32.mrb[8].mxu0 }
 0x226   :  { %v357_v30 = vadd.f32 1e-05, %v621_v29  ;;  %v351_v31 = vpop.f32.mrb[9].mxu0 }
 0x227   :  { %v352_v32 = vadd.f32 1e-05, %v351_v31 }
 0x228   :  { %715 = vrsqrt.f32 %v357_v30 }
 0x229   :  { %717 = vrsqrt.f32 %v352_v32 }
 0x22d   :  { %v624_v35 = vpop.f32.mrb[10].mxu0 }
 0x22e   :  { %v367_v37 = vadd.f32 1e-05, %v624_v35  ;;  %v361_v38 = vpop.f32.mrb[11].mxu0 }
 0x22f   :  { %v362_v39 = vadd.f32 1e-05, %v361_v38 }
 0x230   :  { %719 = vrsqrt.f32 %v367_v37 }
 0x231   :  { %721 = vrsqrt.f32 %v362_v39 }
 0x232   :  { %v716_v4 = vpop.eup %715 }
 0x233   :  { %v718_v43 = vpop.eup %717  ;;  %v375_v45 = vmul.f32 %v716_v4, %v973_v40 }
 0x234   :  { %v374_v47 = vmul.f32 %v718_v43, %v969_v36 }
 0x235   :  { %v383_v49 = vmul.f32 %v381_v42, %v375_v45 }
 0x236   :  { %v382_v50 = vmul.f32 %v381_v42, %v374_v47 }
 0x237   :  { %v391_v51 = vadd.f32 %v389_v46, %v383_v49 }
 0x238   :  { %v390_v52 = vadd.f32 %v389_v46, %v382_v50 }
 0x239   :  { %v395_v53 = vmax.f32 %v391_v51, 0.0 }
 0x23a   :  { %v720_v54 = vpop.eup %719  ;;  %v394_v55 = vmax.f32 %v390_v52, 0.0 }
 0x23b   :  { %v722_v56 = vpop.eup %721  ;;  %428 = vrot.lane.b32.xlu1 %v395_v53, %s724_s27  ;;  %v411_v57 = vrot.slane %v395_v53, 1  ;;  %v377_v58 = vmul.f32 %v720_v54, %v983_v48  ;;  %v399_v59 = vrot.slane %v395_v53, 7 }
 0x23c   :  { %426 = vrot.lane.b32.xlu0 %v394_v55, %s724_s27  ;;  %v398_v40 = vrot.slane %v394_v55, 7  ;;  %v410_v33 = vrot.slane %v394_v55, 1  ;;  %v376_v36 = vmul.f32 %v722_v56, %v978_v44 }
 0x23d   :  { %v385_v60 = vmul.f32 %v381_v42, %v377_v58 }
 0x23e   :  { %v416_v61 = vsel %vm106_vm1, %v410_v33, %v411_v57  ;;  %v384_v62 = vmul.f32 %v381_v42, %v376_v36  ;;  %v404_v63 = vsel %vm93_vm2, %v398_v40, %v399_v59 }
 0x23f   :  { %587 = vmatprep.mubr.msk.f32.mxu1 %vm131_vm0, %v416_v61  ;;  %v393_v0 = vadd.f32 %v389_v46, %v385_v60 }
 0x240   :  { %v392_v1 = vadd.f32 %v389_v46, %v384_v62 }
 0x241   :  { %v397_v48 = vmax.f32 %v393_v0, 0.0 }
 0x242   :  { %v396_v5 = vmax.f32 %v392_v1, 0.0 }
 0x243   :  { %432 = vrot.lane.b32.xlu1 %v397_v48, %s724_s27  ;;  %v401_v6 = vrot.slane %v397_v48, 7  ;;  %v413_v7 = vrot.slane %v397_v48, 1 }
 0x244   :  { %v400_v8 = vrot.slane %v396_v5, 7  ;;  %v412_v44 = vrot.slane %v396_v5, 1  ;;  %430 = vrot.lane.b32.xlu0 %v396_v5, %s724_s27 }
 0x245   :  { %v405_v9 = vsel %vm93_vm2, %v401_v6, %v398_v40  ;;  %v417_v10 = vsel %vm106_vm1, %v413_v7, %v410_v33 }
 0x246   :  { %v415_v11 = vsel %vm106_vm1, %v411_v57, %v412_v44  ;;  %v414_v12 = vsel %vm106_vm1, %v412_v44, %v413_v7  ;;  %v403_v13 = vsel %vm93_vm2, %v399_v59, %v400_v8  ;;  %v402_v15 = vsel %vm93_vm2, %v400_v8, %v401_v6 }
 0x247   :  { %v406_v18 = vsel %vm905_vm3, 0.0, %v405_v9  ;;  %v419_v22 = vsel %vm909_vm4, 0.0, %v415_v11  ;;  %v408_v24 = vsel %vm927_vm5, 0.0, %v403_v13  ;;  %v421_v26 = vsel %vm937_vm6, 0.0, %v417_v10 }
 0x2ad   :  { %v429_v20 = vpop.permute.xlu1 %428 }
 0x2ae   :  { %v427_v17 = vpop.permute.xlu0 %426  ;;  %v439_v23 = vsel %vm131_vm0, %v404_v63, %v429_v20 }
 0x2af   :  { %v438_v19 = vsel %vm131_vm0, %v406_v18, %v427_v17 }
 0x2b0   :  { %550 = vmatmul.mubr.f32.vlgmr.msra.gmra.mrb[0].mxu1 %v438_v19 }
 0x2b1   :  { %588 = vmatprep.mubr.msk.f32.mxu1 %vm131_vm0, %v419_v22 }
 0x2b4   :  { %555 = vmatmul.mubr.f32.gmra.mrb[2].mxu1 %v439_v23 }
 0x2b5   :  { %589 = vmatprep.mubr.msk.f32.mxu1 %vm131_vm0, %v414_v12  ;;  %v433_v25 = vpop.permute.xlu1 %432 }
 0x2b6   :  { %v431_v16 = vpop.permute.xlu0 %430  ;;  %v441_v3 = vsel %vm131_vm0, %v402_v15, %v433_v25 }
 0x2b7   :  { %v440_v2 = vsel %vm131_vm0, %v408_v24, %v431_v16 }
 0x2b8   :  { %560 = vmatmul.mubr.f32.gmra.mrb[4].mxu1 %v440_v2 }
 0x2b9   :  { %590 = vmatprep.mubr.msk.f32.mxu1 %vm131_vm0, %v421_v26 }
 0x2bc   :  { %565 = vmatmul.mubr.f32.gmra.mrb[6].mxu1 %v441_v3 }
 0x383   :  { %v551_v28 = vpop.f32.mrb[0].mxu1 }
 0x384   :  { %v552_v29 = vadd.f32 %v586_v27, %v551_v28  ;;  %v553_v14 = vpop.f32.mrb[1].mxu1 }
 0x386   :  { %570 = vst [vmem:[%s1137_s6] sm:$0xff] %v552_v29 }
 0x387   :  { %v556_v30 = vpop.f32.mrb[2].mxu1 }
 0x388   :  { %v557_v31 = vadd.f32 %v586_v27, %v556_v30  ;;  %v558_v21 = vpop.f32.mrb[3].mxu1 }
 0x38a   :  { %571 = vst [vmem:[%s1137_s6 + $0x8] sm:$0xff] %v557_v31 }
 0x38b   :  { %v561_v32 = vpop.f32.mrb[4].mxu1 }
 0x38c   :  { %v562_v34 = vadd.f32 %v586_v27, %v561_v32  ;;  %v563_v35 = vpop.f32.mrb[5].mxu1 }
 0x38e   :  { %572 = vst [vmem:[%s1137_s6 + $0x10] sm:$0xff] %v562_v34 }
 0x38f   :  { %v566_v37 = vpop.f32.mrb[6].mxu1 }
 0x390   :  { %v567_v38 = vadd.f32 %v586_v27, %v566_v37  ;;  %v568_v39 = vpop.f32.mrb[7].mxu1 }
 0x392   :  { %573 = vst [vmem:[%s1137_s6 + $0x18] sm:$0xff] %v567_v38 }

</bundles_post_ra>
